<compile_context>
chip_gen: v6e
topology: v6e:2x2x1
jax: 0.10.0
libtpu: 0.0.40
codegen_flags: <defaults>
</compile_context>

<pallas_src>
from functools import partial

import numpy as np
import jax
import jax.numpy as jnp
from jax import lax
from jax.experimental import pallas as pl
from jax.experimental.pallas import tpu as pltpu


# ----------------------------------------------------------------------------
# Kernel
# ----------------------------------------------------------------------------
def _transe_kernel(ids_ref, table_ref, out_ref, *, nt_pad):
    # Zero the resident per-core output accumulator on the first reduction step.
    @pl.when(pl.program_id(1) == 0)
    def _():
        out_ref[...] = jnp.zeros_like(out_ref)

    t_tile = ids_ref.shape[0]
    k_tot = table_ref.shape[0]          # NT_pad + NR_pad (MXU contraction depth)
    r = out_ref.shape[1]

    # --- unpack the bit-packed id stream (dom | ran<<8 | rel<<16 | seg<<24) --
    packed = ids_ref[...]                               # (T_tile, 1) int32
    dom = packed & 0xFF
    ran = (packed >> 8) & 0xFF
    rel = ((packed >> 16) & 0xFF) + nt_pad              # offset into concat table
    seg = (packed >> 24) & 0xFF                         # 0xFF sentinel = pad row

    # --- fused on-chip gather: a single K = NT_pad + NR_pad MXU dot ----------
    # Each row of `sel` is onehot(dom) - onehot(ran) + onehot(rel+NT_pad), so
    # one matmul yields diff = type_emb[dom] + rel_emb[rel] - type_emb[ran].
    k_iota = lax.broadcasted_iota(jnp.int32, (t_tile, k_tot), 1)
    sel = ((k_iota == dom).astype(jnp.float32)
           - (k_iota == ran).astype(jnp.float32)
           + (k_iota == rel).astype(jnp.float32))
    diff = jnp.dot(sel, table_ref[...], preferred_element_type=jnp.float32)
    sq = diff * diff                                    # (T_tile, D)

    # --- pure 0/1 segment one-hot (1/n mean scale is applied in the wrapper) -
    # Padded rows carry seg == 0xFF which matches no kept output column.
    seg_iota = lax.broadcasted_iota(jnp.int32, (t_tile, r), 1)
    seg_oh = (seg_iota == seg).astype(jnp.float32)      # (T_tile, R)

    # --- contract over T on the MXU, reduce over D, accumulate ---------------
    dr = lax.dot_general(sq, seg_oh, (((0,), (0,)), ((), ())),
                         preferred_element_type=jnp.float32)   # (D, R)
    out_ref[0:1, :] += jnp.sum(dr, axis=0, keepdims=True)


# ----------------------------------------------------------------------------
# pallas_call wrapper
# ----------------------------------------------------------------------------
def transe_pallas(packed_ids, table, *, t_tile, core_splits, nt_pad, r_pad):
    """packed_ids: (T_pad, 1) int32; table: (NT_pad + NR_pad, D) float32.
    Returns (core_splits * 8, r_pad) float32 raw per-relation sums of
    ||type[dom] + rel - type[ran]||^2 (only rows 0, 8, ... are non-zero)."""
    t_pad = packed_ids.shape[0]
    k_tot, d = table.shape
    steps = t_pad // (core_splits * t_tile)
    assert steps * core_splits * t_tile == t_pad

    flops = int(2 * t_pad * d * (k_tot + r_pad) + 4 * t_pad * d)
    bytes_accessed = int(4 * (t_pad + k_tot * d + core_splits * 8 * r_pad))

    return pl.pallas_call(
        partial(_transe_kernel, nt_pad=nt_pad),
        out_shape=jax.ShapeDtypeStruct((core_splits * 8, r_pad), jnp.float32),
        grid_spec=pltpu.PrefetchScalarGridSpec(
            num_scalar_prefetch=0,
            grid=(core_splits, steps),
            in_specs=[
                # single packed id stream, tiled along T
                pl.BlockSpec((t_tile, 1), lambda c, i: (c * steps + i, 0)),
                # concatenated [type_emb ; rel_emb] table, resident in VMEM
                pl.BlockSpec((k_tot, d), lambda c, i: (0, 0)),
            ],
            # per-core resident accumulator block (constant across the T axis)
            out_specs=pl.BlockSpec((8, r_pad), lambda c, i: (c, 0)),
        ),
        compiler_params=pltpu.CompilerParams(
            # axis 0: core split (uses v7x's 2nd TensorCore, serial elsewhere);
            # axis 1: T reduction with a resident output block.
            dimension_semantics=("parallel", "arbitrary"),
            # Well above actual need (<~18 MiB at t_tile=2048) and well below
            # v7x's 64 MiB physical VMEM.
            vmem_limit_bytes=32 * 1024 * 1024,
        ),
        cost_estimate=pl.CostEstimate(flops=flops, transcendentals=0,
                                      bytes_accessed=bytes_accessed),
    )(packed_ids, table)


# ----------------------------------------------------------------------------
# Host-side glue (index construction, packing, epilogue)
# ----------------------------------------------------------------------------
def _round_up(x, m):
    return ((x + m - 1) // m) * m


_MAX_SINGLE_TILE = 2048            # per-tile intermediates stay << 32 MiB VMEM
_TILE_CANDIDATES = (512, 1024, 2048)
_CORE_SPLITS = 2                   # leading 'parallel' axis for v7x's 2 TCs
# TODO(synk): query pltpu.get_tpu_info() to gate _CORE_SPLITS / tile choice by
# TPU generation instead of using one static heuristic.


def _plan_tiles(T):
    """Return (core_splits, t_tile, T_pad).  Small T -> one exact-fit tile
    (no padded-row compute waste); large T -> 2-way core split with the tile
    size that minimizes padded rows (ties -> bigger tile, fewer steps)."""
    T = max(T, 1)
    if T <= _MAX_SINGLE_TILE:
        t = _round_up(T, 8)
        return 1, t, t
    best = None
    for tt in _TILE_CANDIDATES:
        t_pad = _round_up(T, _CORE_SPLITS * tt)
        cand = (t_pad, -tt, tt)
        if best is None or cand < best:
            best = cand
    return _CORE_SPLITS, best[2], best[0]


def transe_forward(type_emb, rel_emb, rel_labels, head_eids, tail_eids, ent2types):
    """Python glue reproducing TransE.forward index construction, then the
    Pallas kernel for gather + score + per-relation sum; mean/negate epilogue
    applied on the returned rows."""
    num_rels = len(rel_labels)
    ent2types_arr = np.array(ent2types, dtype=object)

    if len(head_eids) == 1:
        doms = [list(ent2types_arr[head_eids][0])]
        rans = [list(ent2types_arr[tail_eids][0])]
    else:
        doms = [list(x) for x in ent2types_arr[head_eids].tolist()]
        rans = [list(x) for x in ent2types_arr[tail_eids].tolist()]

    num_triples = [len(doms[i]) * len(rans[i]) for i in range(len(doms))]
    dom_ids = [doms[i][j] for i in range(len(doms))
               for j in range(len(doms[i])) for _ in range(len(rans[i]))]
    ran_ids = [rans[i][j] for i in range(len(rans))
               for _ in range(len(doms[i])) for j in range(len(rans[i]))]
    rel_ids = [int(rel_labels[i]) for i in range(num_rels)
               for _ in range(num_triples[i])]
    seg_ids = [i for i in range(num_rels) for _ in range(num_triples[i])]

    nt, d = type_emb.shape
    nr = rel_emb.shape[0]
    # Byte-packing limits (ample for this module's type/relation vocabularies).
    assert nt <= 256 and nr <= 256 and num_rels <= 255

    T = len(dom_ids)
    core_splits, t_tile, t_pad = _plan_tiles(T)

    r_pad = _round_up(max(num_rels, 1), 128)     # lane-dense output columns
    nt_pad = _round_up(nt, 128)                  # concat-table MXU depth halves
    nr_pad = _round_up(nr, 128)

    # Bit-pack the four per-triple id streams into one int32 word per triple:
    #   byte0 = dom type, byte1 = ran type, byte2 = rel id, byte3 = segment.
    # Padded rows carry segment byte 0xFF -> matched against no kept column.
    dom_a = np.zeros(t_pad, np.uint32)
    ran_a = np.zeros(t_pad, np.uint32)
    rel_a = np.zeros(t_pad, np.uint32)
    seg_a = np.full(t_pad, 0xFF, np.uint32)
    if T > 0:
        dom_a[:T] = np.asarray(dom_ids, np.uint32)
        ran_a[:T] = np.asarray(ran_ids, np.uint32)
        rel_a[:T] = np.asarray(rel_ids, np.uint32)
        seg_a[:T] = np.asarray(seg_ids, np.uint32)
    packed = (dom_a | (ran_a << 8) | (rel_a << 16) | (seg_a << 24)).view(np.int32)
    packed = packed.reshape(t_pad, 1)

    # Concatenated, row-padded [type_emb ; rel_emb] table kept resident in VMEM.
    table = np.zeros((nt_pad + nr_pad, d), np.float32)
    table[:nt] = np.asarray(type_emb, np.float32)
    table[nt_pad:nt_pad + nr] = np.asarray(rel_emb, np.float32)

    raw = transe_pallas(jnp.asarray(packed), jnp.asarray(table),
                        t_tile=t_tile, core_splits=core_splits,
                        nt_pad=nt_pad, r_pad=r_pad)

    # Epilogue: sum the per-core partial rows, apply the per-relation 1/n mean
    # and the TransE minus sign; empty relations get score 0.0 (inv == 0).
    inv_cnt = np.zeros(num_rels, np.float32)
    for i, n in enumerate(num_triples):
        if n > 0:
            inv_cnt[i] = 1.0 / n
    sums = jnp.sum(raw, axis=0)[:num_rels]
    return -sums * jnp.asarray(inv_cnt)


# ----------------------------------------------------------------------------
# Reference + tests
# ----------------------------------------------------------------------------
def _numpy_reference(type_emb, rel_emb, rel_labels, head_eids, tail_eids, ent2types):
    te = np.asarray(type_emb, np.float32)
    re_ = np.asarray(rel_emb, np.float32)
    ref = []
    for i in range(len(rel_labels)):
        d_list = ent2types[int(head_eids[i])]
        r_list = ent2types[int(tail_eids[i])]
        if len(d_list) == 0 or len(r_list) == 0:
            ref.append(0.0)
            continue
        dm = te[np.asarray(d_list)][:, None, :]
        rn = te[np.asarray(r_list)][None, :, :]
        s = -np.sum((dm + re_[int(rel_labels[i])] - rn) ** 2, axis=-1)
        ref.append(float(np.mean(s)))
    return np.asarray(ref, np.float32)


if __name__ == "__main__":
    key = jax.random.PRNGKey(0)

    # ---- Test 1: small batch incl. an empty-type entity (score must be 0) ---
    num_types, type_emb_dim, num_rel_vocab = 10, 32, 6
    k1, k2 = jax.random.split(key)
    type_emb1 = np.asarray(jax.random.normal(k1, (num_types, type_emb_dim), jnp.float32))
    rel_emb1 = np.asarray(jax.random.normal(k2, (num_rel_vocab, type_emb_dim), jnp.float32))
    rel_labels1 = np.array([0, 3, 5, 2], dtype=np.int64)
    head_eids1 = np.array([0, 2, 5, 6], dtype=np.int64)
    tail_eids1 = np.array([1, 3, 4, 7], dtype=np.int64)
    ent2types1 = [[0, 1], [2, 3], [4], [1, 5, 6], [7], [], [8, 9], [0, 4]]

    out1 = jax.block_until_ready(transe_forward(
        type_emb1, rel_emb1, rel_labels1, head_eids1, tail_eids1, ent2types1))
    ref1 = _numpy_reference(type_emb1, rel_emb1, rel_labels1,
                            head_eids1, tail_eids1, ent2types1)
    assert np.allclose(np.asarray(out1), ref1, rtol=1e-4, atol=1e-4)

    # ---- Test 2: larger batch -> exercises T tiling + 2-way core split ------
    num_types, type_emb_dim, num_rel_vocab = 64, 48, 16
    num_rels, types_per_ent = 100, 10                     # T = 100 * 100 = 10000
    k1, k2, k3, k4 = jax.random.split(key, 4)
    type_emb2 = np.asarray(jax.random.normal(k1, (num_types, type_emb_dim), jnp.float32))
    rel_emb2 = np.asarray(jax.random.normal(k2, (num_rel_vocab, type_emb_dim), jnp.float32))
    rel_labels2 = np.asarray(jax.random.randint(k3, (num_rels,), 0, num_rel_vocab))
    ent_types = np.asarray(jax.random.randint(
        k4, (2 * num_rels, types_per_ent), 0, num_types))
    ent2types2 = [list(map(int, row)) for row in ent_types]
    head_eids2 = np.arange(num_rels)
    tail_eids2 = np.arange(num_rels, 2 * num_rels)

    out2 = jax.block_until_ready(transe_forward(
        type_emb2, rel_emb2, rel_labels2, head_eids2, tail_eids2, ent2types2))
    ref2 = _numpy_reference(type_emb2, rel_emb2, rel_labels2,
                            head_eids2, tail_eids2, ent2types2)
    assert np.allclose(np.asarray(out2), ref2, rtol=1e-4, atol=1e-4)

    print("KERNEL_OK")
</pallas_src>

<mosaic_0001>
module attributes {stable_mosaic.version = 11 : i64} {
  func.func @_transe_kernel(%arg0: i32, %arg1: i32, %arg2: memref<16x1xi32, #tpu.memory_space<vmem>>, %arg3: memref<256x32xf32, #tpu.memory_space<vmem>>, %arg4: memref<8x128xf32, #tpu.memory_space<vmem>>) attributes {dimension_semantics = [#tpu.dimension_semantics<parallel>, #tpu.dimension_semantics<arbitrary>], iteration_bounds = array<i64: 1, 1>, scalar_prefetch = 0 : i64, scratch_operands = 0 : i64, tpu.core_type = #tpu.core_type<tc>, window_params = [{transform_indices = @transform_0, window_bounds = array<i64: 16, 1>}, {pipeline_mode = #tpu.pipeline_mode<synchronous>, transform_indices = @transform_1, window_bounds = array<i64: 256, 32>}, {transform_indices = @transform_2, window_bounds = array<i64: 8, 128>}]} {
    %c0_i32 = arith.constant 0 : i32
    %0 = arith.cmpi eq, %arg1, %c0_i32 : i32
    %1 = arith.extui %0 : i1 to i32
    %c0_i32_0 = arith.constant 0 : i32
    %2 = arith.cmpi ne, %1, %c0_i32_0 : i32
    scf.if %2 {
      %cst_13 = arith.constant 0.000000e+00 : f32
      %49 = vector.broadcast %cst_13 : f32 to vector<8x128xf32>
      %c0_14 = arith.constant 0 : index
      %c0_15 = arith.constant 0 : index
      %50 = vector.load %arg4[%c0_14, %c0_15] : memref<8x128xf32, #tpu.memory_space<vmem>>, vector<8x128xf32>
      tpu.vector_store %arg4[%c0_14, %c0_15], %49 {strides = array<i32>} : memref<8x128xf32, #tpu.memory_space<vmem>>, vector<8x128xf32>,
    } else {
    }
    %c0 = arith.constant 0 : index
    %c0_1 = arith.constant 0 : index
    %3 = vector.load %arg2[%c0, %c0_1] : memref<16x1xi32, #tpu.memory_space<vmem>>, vector<16x1xi32>
    %c255_i32 = arith.constant 255 : i32
    %4 = vector.broadcast %c255_i32 : i32 to vector<16x1xi32>
    %5 = arith.andi %3, %4 : vector<16x1xi32>
    %c8_i32 = arith.constant 8 : i32
    %6 = vector.broadcast %c8_i32 : i32 to vector<16x1xi32>
    %7 = arith.shrsi %3, %6 : vector<16x1xi32>
    %c255_i32_2 = arith.constant 255 : i32
    %8 = vector.broadcast %c255_i32_2 : i32 to vector<16x1xi32>
    %9 = arith.andi %7, %8 : vector<16x1xi32>
    %c16_i32 = arith.constant 16 : i32
    %10 = vector.broadcast %c16_i32 : i32 to vector<16x1xi32>
    %11 = arith.shrsi %3, %10 : vector<16x1xi32>
    %c255_i32_3 = arith.constant 255 : i32
    %12 = vector.broadcast %c255_i32_3 : i32 to vector<16x1xi32>
    %13 = arith.andi %11, %12 : vector<16x1xi32>
    %c128_i32 = arith.constant 128 : i32
    %14 = vector.broadcast %c128_i32 : i32 to vector<16x1xi32>
    %15 = arith.addi %13, %14 : vector<16x1xi32>
    %c24_i32 = arith.constant 24 : i32
    %16 = vector.broadcast %c24_i32 : i32 to vector<16x1xi32>
    %17 = arith.shrsi %3, %16 : vector<16x1xi32>
    %c255_i32_4 = arith.constant 255 : i32
    %18 = vector.broadcast %c255_i32_4 : i32 to vector<16x1xi32>
    %19 = arith.andi %17, %18 : vector<16x1xi32>
    %20 = tpu.iota {dimensions = array<i32: 1>} : vector<16x256xi32>
    %21 = vector.broadcast %5 : vector<16x1xi32> to vector<16x256xi32>
    %22 = arith.cmpi eq, %20, %21 : vector<16x256xi32>
    %23 = arith.extui %22 : vector<16x256xi1> to vector<16x256xi32>
    %24 = arith.sitofp %23 : vector<16x256xi32> to vector<16x256xf32>
    %25 = vector.broadcast %9 : vector<16x1xi32> to vector<16x256xi32>
    %26 = arith.cmpi eq, %20, %25 : vector<16x256xi32>
    %27 = arith.extui %26 : vector<16x256xi1> to vector<16x256xi32>
    %28 = arith.sitofp %27 : vector<16x256xi32> to vector<16x256xf32>
    %29 = arith.subf %24, %28 : vector<16x256xf32>
    %30 = vector.broadcast %15 : vector<16x1xi32> to vector<16x256xi32>
    %31 = arith.cmpi eq, %20, %30 : vector<16x256xi32>
    %32 = arith.extui %31 : vector<16x256xi1> to vector<16x256xi32>
    %33 = arith.sitofp %32 : vector<16x256xi32> to vector<16x256xf32>
    %34 = arith.addf %29, %33 : vector<16x256xf32>
    %c0_5 = arith.constant 0 : index
    %c0_6 = arith.constant 0 : index
    %35 = vector.load %arg3[%c0_5, %c0_6] : memref<256x32xf32, #tpu.memory_space<vmem>>, vector<256x32xf32>
    %cst = arith.constant dense<0.000000e+00> : vector<16x32xf32>
    %36 = tpu.matmul %34, %35, %cst {dimension_numbers = #tpu.dot_dimension_numbers<[1], [0], [0], [1], [0, 0, 1, 1], [], []>} : vector<16x256xf32>, vector<256x32xf32>, vector<16x32xf32> -> vector<16x32xf32>
    %37 = arith.mulf %36, %36 : vector<16x32xf32>
    %38 = tpu.iota {dimensions = array<i32: 1>} : vector<16x128xi32>
    %39 = vector.broadcast %19 : vector<16x1xi32> to vector<16x128xi32>
    %40 = arith.cmpi eq, %38, %39 : vector<16x128xi32>
    %41 = arith.extui %40 : vector<16x128xi1> to vector<16x128xi32>
    %42 = arith.sitofp %41 : vector<16x128xi32> to vector<16x128xf32>
    %cst_7 = arith.constant dense<0.000000e+00> : vector<32x128xf32>
    %43 = tpu.matmul %37, %42, %cst_7 {dimension_numbers = #tpu.dot_dimension_numbers<[0], [0], [1], [1], [0, 1, 1, 1], [], []>} : vector<16x32xf32>, vector<16x128xf32>, vector<32x128xf32> -> vector<32x128xf32>
    %c0_8 = arith.constant 0 : index
    %c0_9 = arith.constant 0 : index
    %44 = vector.load %arg4[%c0_8, %c0_9] : memref<8x128xf32, #tpu.memory_space<vmem>>, vector<1x128xf32>
    %cst_10 = arith.constant dense<0.000000e+00> : vector<128xf32>
    %45 = vector.multi_reduction <add>, %43, %cst_10 [0] : vector<32x128xf32> to vector<128xf32>
    %46 = vector.shape_cast %45 : vector<128xf32> to vector<1x128xf32>
    %47 = arith.addf %44, %46 : vector<1x128xf32>
    %c0_11 = arith.constant 0 : index
    %c0_12 = arith.constant 0 : index
    %48 = vector.load %arg4[%c0_11, %c0_12] : memref<8x128xf32, #tpu.memory_space<vmem>>, vector<1x128xf32>
    tpu.vector_store %arg4[%c0_11, %c0_12], %47 {strides = array<i32>} : memref<8x128xf32, #tpu.memory_space<vmem>>, vector<1x128xf32>,
    return
  }
  func.func @transform_0(%arg0: i32, %arg1: i32) -> (i32, i32) {
    %c1_i32 = arith.constant 1 : i32
    %0 = arith.muli %arg0, %c1_i32 : i32
    %1 = arith.addi %0, %arg1 : i32
    %c0_i32 = arith.constant 0 : i32
    %c0_i32_0 = arith.constant 0 : i32
    return %1, %c0_i32 : i32, i32
  }
  func.func @transform_1(%arg0: i32, %arg1: i32) -> (i32, i32) {
    %c0_i32 = arith.constant 0 : i32
    %c0_i32_0 = arith.constant 0 : i32
    %c0_i32_1 = arith.constant 0 : i32
    return %c0_i32, %c0_i32_0 : i32, i32
  }
  func.func @transform_2(%arg0: i32, %arg1: i32) -> (i32, i32) {
    %c0_i32 = arith.constant 0 : i32
    %c0_i32_0 = arith.constant 0 : i32
    return %arg0, %c0_i32 : i32, i32
  }
}

</mosaic_0001>

<bundles_post_ra>
// kernel: tpu_custom_call.1
= control target key start
LH: loop header
LB: loop body
LE: loop exit
PB: predicated region body
PF: predicated region fallthrough
CT: control target
= control target key end

     0   :  { %v509_v3 = vmov 0   ;;  %v510_v9 = vmov 0.0   ;;  %s646_s0 = inlined_call_operand.vmem [shape: s32[16,1], index: 0, kind: input, shape index: {}]   ;;  %s647_s1 = inlined_call_operand.vmem [shape: f32[256,32], index: 1, kind: input, shape index: {}]   ;;  %s648_s2 = inlined_call_operand.hbm [shape: f32[8,128], index: 2, kind: output, shape index: {}]  }
   0x1   :  { %v40_v0 = vld [vmem:[%s646_s0 + $0x8] sm:$0xff]  ;;  %v39_v1 = vld [vmem:[%s646_s0] sm:$0xff]  ;;  %v153_v2 = vld [vmem:[%s647_s1 + $0xf8] sm:$0xff]  ;;  %486 = vset.pattern.permute.xlu1 %v509_v3  ;;  %485 = vset.pattern.permute.xlu0 %v509_v3  ;;  %38 = vst [vmem:[#allocation2] sm:$0xff] %v510_v9 }
   0x2   :  { %v42_v4 = vand.u32 255, %v40_v0  ;;  %v41_v5 = vand.u32 255, %v39_v1  ;;  %v47_v6 = vshra.s32 %v39_v1, 16  ;;  %v43_v7 = vshra.s32 %v39_v1, 8  ;;  %v137_v8 = vld [vmem:[%s647_s1 + $0x78] sm:$0xff]  ;;  %427 = vmatprep.subr.mxu0 %v153_v2  ;;  %v152_v11 = vld [vmem:[%s647_s1 + $0xf0] sm:$0xff] }
   0x3   :  { %v48_v10 = vshra.s32 %v40_v0, 16  ;;  %v44_v14 = vshra.s32 %v40_v0, 8  ;;  %v136_v15 = vld [vmem:[%s647_s1 + $0x70] sm:$0xff]  ;;  %428 = vmatpush3.msra.mxu0 %v137_v8  ;;  %v151_v18 = vld [vmem:[%s647_s1 + $0xe8] sm:$0xff]  ;;  %v150_v22 = vld [vmem:[%s647_s1 + $0xe0] sm:$0xff]  ;;  %v405_v25 = vshrl.u32 %v39_v1, 24 }
   0x4   :  { %64 = vperm.xlu1 %486, %v42_v4   ;;  %61 = vperm.xlu0 %485, %v41_v5   ;;  %v49_v12 = vand.u32 255, %v47_v6  ;;  %v45_v13 = vand.u32 255, %v43_v7  ;;  %v135_v19 = vld [vmem:[%s647_s1 + $0x68] sm:$0xff]  ;;  %v134_v23 = vld [vmem:[%s647_s1 + $0x60] sm:$0xff]  ;;  %v149_v24 = vld [vmem:[%s647_s1 + $0xd8] sm:$0xff]  ;;  %v406_v26 = vshrl.u32 %v40_v0, 24 }
   0x5   :  { %v50_v16 = vand.u32 255, %v48_v10  ;;  %429 = vmatprep.subr.mxu0 %v152_v11  ;;  %v46_v21 = vand.u32 255, %v44_v14  ;;  %v133_v27 = vld [vmem:[%s647_s1 + $0x58] sm:$0xff] }
   0x6   :  { %v51_v17 = vadd.s32 128, %v49_v12  ;;  %430 = vmatpush3.msra.mxu0 %v136_v15 }
   0x7   :  { %v52_v20 = vadd.s32 128, %v50_v16  ;;  %431 = vmatprep.subr.mxu0 %v151_v18 }
   0x8   :  { %101 = vperm.xlu1 %486, %v51_v17   ;;  %79 = vperm.xlu0 %485, %v45_v13  }
   0x9   :  { %432 = vmatpush3.msra.mxu0 %v135_v19 }
   0xa   :  { %433 = vmatprep.subr.mxu0 %v150_v22 }
   0xb   :  { %434 = vmatpush3.msra.mxu0 %v134_v23 }
   0xc   :  { %104 = vperm.xlu1 %486, %v52_v20   ;;  %82 = vperm.xlu0 %485, %v46_v21  }
   0xd   :  { %7 = vsyncpa [#allocation3], 0  ;;  %435 = vmatprep.subr.mxu0 %v149_v24  ;;  %v148_v28 = vld [vmem:[%s647_s1 + $0xd0] sm:$0xff]  ;;  %v147_v30 = vld [vmem:[%s647_s1 + $0xc8] sm:$0xff]  ;;  %v57_v50 = vlaneseq  ;;  %v511_v17 = vmov 1.0   ;;  %vm275_vm14 = vcmask 130048  }
   0xe   :  { %436 = vmatpush3.msra.mxu0 %v133_v27  ;;  %v132_v29 = vld [vmem:[%s647_s1 + $0x50] sm:$0xff]  ;;  %v131_v31 = vld [vmem:[%s647_s1 + $0x48] sm:$0xff]  ;;  %v146_v32 = vld [vmem:[%s647_s1 + $0xc0] sm:$0xff] }
   0xf   :  { %437 = vmatprep.subr.mxu0 %v148_v28  ;;  %v130_v33 = vld [vmem:[%s647_s1 + $0x40] sm:$0xff]  ;;  %v145_v34 = vld [vmem:[%s647_s1 + $0xb8] sm:$0xff]  ;;  %v144_v36 = vld [vmem:[%s647_s1 + $0xb0] sm:$0xff]  ;;  %v58_v51 = vand.u32 127, %v57_v50 }
  0x10   :  { %232 = vperm.xlu1 %486, %v405_v25   ;;  %235 = vperm.xlu0 %485, %v406_v26   ;;  %v129_v35 = vld [vmem:[%s647_s1 + $0x38] sm:$0xff]  ;;  %v128_v37 = vld [vmem:[%s647_s1 + $0x30] sm:$0xff]  ;;  %v143_v38 = vld [vmem:[%s647_s1 + $0xa8] sm:$0xff] }
  0x11   :  { %438 = vmatpush3.msra.mxu0 %v132_v29  ;;  %v127_v39 = vld [vmem:[%s647_s1 + $0x28] sm:$0xff]  ;;  %v142_v40 = vld [vmem:[%s647_s1 + $0xa0] sm:$0xff]  ;;  %v141_v42 = vld [vmem:[%s647_s1 + $0x98] sm:$0xff]  ;;  %v59_v52 = vadd.s32 128, %v58_v51 }
  0x12   :  { %439 = vmatprep.subr.mxu0 %v147_v30  ;;  %v126_v41 = vld [vmem:[%s647_s1 + $0x20] sm:$0xff]  ;;  %v125_v43 = vld [vmem:[%s647_s1 + $0x18] sm:$0xff]  ;;  %v140_v44 = vld [vmem:[%s647_s1 + $0x90] sm:$0xff] }
  0x13   :  { %440 = vmatpush3.msra.mxu0 %v131_v31  ;;  %v124_v45 = vld [vmem:[%s647_s1 + $0x10] sm:$0xff]  ;;  %v139_v46 = vld [vmem:[%s647_s1 + $0x88] sm:$0xff]  ;;  %v138_v48 = vld [vmem:[%s647_s1 + $0x80] sm:$0xff] }
  0x14   :  { %441 = vmatprep.subr.mxu0 %v146_v32  ;;  %v123_v47 = vld [vmem:[%s647_s1 + $0x8] sm:$0xff]  ;;  %v122_v49 = vld [vmem:[%s647_s1] sm:$0xff]  ;;  %s512_s1 = smov [#allocation2]  }
  0x15   :  { %442 = vmatpush3.msra.mxu0 %v130_v33  ;;  %s391_s18 = sshll.u32 %s512_s1, 4  ;;  %s392_s18 = int_to_ptr.vmem [resolvable:$true] %s391_s18 }
  0x16   :  { %443 = vmatprep.subr.mxu0 %v145_v34  ;;  %s487_s19 = scalar_lea.vmem %s392_s18, 128  ;;  %p492_p1 = scmp.lt.s32.totalorder %s392_s18, %s392_s18 }
  0x17   :  { %444 = vmatpush3.msra.mxu0 %v129_v35  ;;  %p488_p0 = scmp.ne.s32.totalorder %s392_s18, %s487_s19  ;;  %p493_p2 = scmp.lt.s32.totalorder %s487_s19, %s487_s19 }
  0x18   :  { %445 = vmatprep.subr.mxu0 %v144_v36 }
  0x19   :  { %446 = vmatpush3.msra.mxu0 %v128_v37  ;;  %p494_p3 = por %p493_p2, %p492_p1 }
  0x1a   :  { %447 = vmatprep.subr.mxu0 %v143_v38 }
  0x1b   :  { %448 = vmatpush3.msra.mxu0 %v127_v39  ;;  %p495_p4 = pnand %p494_p3, %p488_p0 }
  0x1c   :  { %449 = vmatprep.subr.mxu0 %v142_v40 }
  0x1d   :  { %450 = vmatpush3.msra.mxu0 %v126_v41 }
  0x1e   :  { %451 = vmatprep.subr.mxu0 %v141_v42  ;;  %v373_v42 = vld [vmem:[#allocation2] sm:$0x1] }
  0x1f   :  { %452 = vmatpush3.msra.mxu0 %v125_v43 }
  0x20   :  { %453 = vmatprep.subr.mxu0 %v140_v44 }
  0x21   :  { %454 = vmatpush3.msra.mxu0 %v124_v45 }
  0x22   :  { %455 = vmatprep.subr.mxu0 %v139_v46 }
  0x23   :  { %456 = vmatpush3.msra.mxu0 %v123_v47 }
  0x24   :  { %457 = vmatprep.subr.mxu0 %v138_v48 }
  0x25   :  { %458 = vmatpush3.msra.mxu0 %v122_v49 }
  0x7f   :  { %v65_v53 = vpop.permute.xlu1 %64  ;;  %v62_v54 = vpop.permute.xlu0 %61 }
  0x80   :  { %vm66_vm0 = vcmp.eq.s32.totalorder %v58_v51, %v62_v54  ;;  %vm67_vm1 = vcmp.eq.s32.totalorder %v59_v52, %v62_v54  ;;  %vm68_vm2 = vcmp.eq.s32.totalorder %v58_v51, %v65_v53  ;;  %vm69_vm3 = vcmp.eq.s32.totalorder %v59_v52, %v65_v53 }
  0x81   :  { %v407_v57 = vsel %vm66_vm0, 1.0, %v510_v9  ;;  %v408_v58 = vsel %vm67_vm1, 1.0, %v510_v9  ;;  %v409_v63 = vsel %vm68_vm2, 1.0, %v510_v9  ;;  %v410_v0 = vsel %vm69_vm3, 1.0, %v510_v9 }
  0x83   :  { %v102_v55 = vpop.permute.xlu1 %101  ;;  %v80_v56 = vpop.permute.xlu0 %79 }
  0x84   :  { %vm84_vm4 = vcmp.eq.s32.totalorder %v58_v51, %v80_v56  ;;  %vm85_vm5 = vcmp.eq.s32.totalorder %v59_v52, %v80_v56  ;;  %vm106_vm6 = vcmp.eq.s32.totalorder %v58_v51, %v102_v55  ;;  %vm107_vm7 = vcmp.eq.s32.totalorder %v59_v52, %v102_v55 }
  0x85   :  { %v411_v59 = vsel %vm84_vm4, 1.0, %v510_v9  ;;  %v412_v60 = vsel %vm85_vm5, 1.0, %v510_v9  ;;  %v415_v3 = vsel %vm106_vm6, 1.0, %v510_v9  ;;  %v416_v6 = vsel %vm107_vm7, 1.0, %v510_v9 }
  0x86   :  { %v96_v61 = vsub.f32 %v407_v57, %v411_v59  ;;  %v97_v62 = vsub.f32 %v408_v58, %v412_v60 }
  0x87   :  { %v105_v1 = vpop.permute.xlu1 %104  ;;  %v83_v2 = vpop.permute.xlu0 %82 }
  0x88   :  { %vm109_vm8 = vcmp.eq.s32.totalorder %v59_v52, %v105_v1  ;;  %vm86_vm9 = vcmp.eq.s32.totalorder %v58_v51, %v83_v2  ;;  %vm87_vm10 = vcmp.eq.s32.totalorder %v59_v52, %v83_v2  ;;  %vm108_vm11 = vcmp.eq.s32.totalorder %v58_v51, %v105_v1 }
  0x89   :  { %v413_v4 = vsel %vm86_vm9, 1.0, %v510_v9  ;;  %v414_v5 = vsel %vm87_vm10, 1.0, %v510_v9  ;;  %v119_v10 = vadd.f32 %v416_v6, %v97_v62  ;;  %v118_v11 = vadd.f32 %v415_v3, %v96_v61 }
  0x8a   :  { %v98_v7 = vsub.f32 %v409_v63, %v413_v4  ;;  %v99_v8 = vsub.f32 %v410_v0, %v414_v5  ;;  %v418_v12 = vsel %vm109_vm8, 1.0, %v510_v9  ;;  %v417_v15 = vsel %vm108_vm11, 1.0, %v510_v9 }
  0x8b   :  { %v233_v13 = vpop.permute.xlu1 %232  ;;  %v236_v14 = vpop.permute.xlu0 %235  ;;  %218 = vmatprep.mubr.f32.mxu0 %v119_v10 }
  0x8c   :  { %vm238_vm12 = vcmp.eq.s32.totalorder %v58_v51, %v236_v14  ;;  %v121_v16 = vadd.f32 %v418_v12, %v99_v8  ;;  %219 = vmatmul.mubr.f32.vlgmr.msra.gmra.mxu0 %v118_v11  ;;  %v120_v18 = vadd.f32 %v417_v15, %v98_v7  ;;  %vm237_vm13 = vcmp.eq.s32.totalorder %v58_v51, %v233_v13 }
  0x8d   :  { %471 = vmatprep.subr.msk.mxu1 %vm238_vm12, %v511_v17 }
  0x8e   :  { %223 = vmatprep.mubr.f32.mxu0 %v121_v16  ;;  %472 = vmatpush3.msk.msra.mxu1 %vm238_vm12, %v511_v17 }
  0x8f   :  { %473 = vmatprep.subr.msk.mxu1 %vm237_vm13, %v511_v17 }
  0x90   :  { %474 = vmatpush3.msk.msra.mxu1 %vm237_vm13, %v511_v17  ;;  %224 = vmatmul.mubr.f32.gmra.mxu0 %v120_v18 }
 0x14c   :  { %v459_v19 = vpop.f32.mrf.mxu0 }
 0x14e   :  { %v460_v20 = vpop.f32.mrf.mxu0 }
 0x14f   :  { %v461_v21 = vadd.f32 %v460_v20, %v459_v19 }
 0x150   :  { %v462_v22 = vpop.f32.mrf.mxu0 }
 0x151   :  { %v229_v23 = vmul.f32 %v461_v21, %v461_v21 }
 0x152   :  { %v463_v24 = vpop.f32.mrf.mxu0 }
 0x153   :  { %v464_v9 = vadd.f32 %v463_v24, %v462_v22  ;;  %243 = vxpose.xlu0.b32.start [1/2] (short) (narrow) %v229_v23, 32 }
 0x155   :  { %v230_v25 = vmul.f32 %v464_v9, %v464_v9 }
 0x157   :  { %244 = vxpose.xlu0.b32.end [2/2] (short) (narrow) %v230_v25, 32 }
 0x1cf   :  { %v259_v26 = vpop.trf.xlu0 }
 0x1d0   :  { %475 = vmatprep.mubr.msk.f32.mxu1 %vm275_vm14, %v259_v26 }
 0x1d3   :  { %v260_v27 = vpop.trf.xlu0 }
 0x1d4   :  { %476 = vmatmul.mubr.msk.f32.vlgmr.msra.gmra.mxu1 %vm275_vm14, %v260_v27 }
 0x1d7   :  { %v261_v28 = vpop.trf.xlu0 }
 0x1d8   :  { %478 = vmatprep.mubr.msk.f32.mxu1 %vm275_vm14, %v261_v28 }
 0x1db   :  { %v262_v29 = vpop.trf.xlu0 }
 0x1dc   :  { %479 = vmatmul.mubr.msk.f32.gmra.mxu1 %vm275_vm14, %v262_v29 }
 0x294   :  { %v477_v30 = vpop.f32.mrf.mxu1 }
 0x296   :  { %v354_v31 = vpop.f32.mrf.mxu1 }
 0x297   :  { %v374_v33 = vadd.f32 %v477_v30, %v354_v31 }
 0x29c   :  { %v480_v32 = vpop.f32.mrf.mxu1 }
 0x29e   :  { %v364_v34 = vpop.f32.mrf.mxu1 }
 0x29f   :  { %v375_v35 = vadd.f32 %v374_v33, %v364_v34 }
 0x2a1   :  { %v376_v36 = vadd.f32 %v480_v32, %v375_v35 }
 0x2a3   :  { %v377_v37 = vrot.slane %v376_v36, 4 }
 0x2a5   :  { %v378_v38 = vadd.f32 %v377_v37, %v376_v36 }
 0x2a7   :  { %v379_v39 = vrot.slane %v378_v38, 2 }
 0x2a9   :  { %v380_v40 = vadd.f32 %v379_v39, %v378_v38 }
 0x2ab   :  { %v381_v41 = vrot.slane %v380_v40, 1 }
 0x2ad   :  { %v382_v43 = vadd.f32 %v381_v41, %v380_v40 }
 0x2af   :  { %v383_v44 = vadd.f32 %v382_v43, %v373_v42 }
 0x2b1   :  { %384 = vst [vmem:[#allocation2] sm:$0x1] %v383_v44 }
 0x2b2   :  { %498 = shalt.err (!%p495_p4)
}
 0x2b3   :  { %394 = dma.vmem_to_hbm [thread:$0]  %s392_s18, 128, %s648_s2, [#allocation3]  }
 0x2b4   :  { %507 = dma.done.wait [#allocation3], 128  }
 0x2b5   :  { %508 = vsyncadd [#allocation3], 4294967168 }
 0x2b6   :  { %398 = vsyncpa [#allocation3], 1 }

</bundles_post_ra>
